<compile_context>
chip_gen: v6e
topology: v6e:2x2x1
jax: 0.10.0
libtpu: 0.0.40
codegen_flags: <defaults>
</compile_context>

<pallas_src>
import jax
import jax.numpy as jnp
from jax.experimental import pallas as pl
from jax.experimental.pallas import tpu as pltpu


_COLS = 512            # lane-dense: 4 x 128 lanes
_MAX_TILE_ROWS = 512   # ~1 MiB f32 tiles -> good HBM-roofline fraction


def _softmax_kernel(x_ref, o_ref, sum_ref):
    phase = pl.program_id(0)   # 0 = accumulate global sum, 1 = scale
    tile = pl.program_id(1)    # row-tile index

    # Always recompute exp for the current tile (cheap on the EUP; avoids an
    # extra HBM round-trip of the unnormalized exp).
    e = jnp.exp(x_ref[...].astype(jnp.float32))

    @pl.when((phase == 0) & (tile == 0))
    def _():
        sum_ref[...] = jnp.zeros_like(sum_ref)

    @pl.when(phase == 0)
    def _():
        # O(tile) XLU reduce per step; cross-grid carry lives in the tiny
        # (1,1) f32 scratch.
        sum_ref[...] += jnp.sum(e, keepdims=True)
        # Deterministic placeholder writeback; phase 1 overwrites every block.
        o_ref[...] = e.astype(o_ref.dtype)

    @pl.when(phase == 1)
    def _():
        inv = pl.reciprocal(sum_ref[...], approx=True)   # (1,1), EUP slot
        o_ref[...] = (e * inv).astype(o_ref.dtype)       # VPU multiply


def softmax_global(x: jax.Array) -> jax.Array:
    """exp(x) / exp(x).sum() over ALL elements — matches the torch module."""
    orig_shape = x.shape
    n = x.size
    cols = _COLS

    rows = pl.cdiv(n, cols)
    # Tile rows: multiple of 8 (sublane), capped at _MAX_TILE_ROWS.
    tile_rows = min(_MAX_TILE_ROWS, ((rows + 7) // 8) * 8)
    num_tiles = pl.cdiv(rows, tile_rows)
    padded_rows = num_tiles * tile_rows

    # Flatten + pad into a lane-dense 2-D slab. exp(-1e30) == 0, so the
    # padding contributes nothing to the global sum.
    flat = x.reshape(-1)
    pad = padded_rows * cols - n
    if pad:
        flat = jnp.concatenate(
            [flat, jnp.full((pad,), -1e30, dtype=x.dtype)])
    x2d = flat.reshape(padded_rows, cols)

    out2d = pl.pallas_call(
        _softmax_kernel,
        out_shape=jax.ShapeDtypeStruct((padded_rows, cols), x.dtype),
        grid_spec=pltpu.PrefetchScalarGridSpec(
            num_scalar_prefetch=0,
            grid=(2, num_tiles),                       # (phase, row-tile)
            in_specs=[
                pl.BlockSpec((tile_rows, cols), lambda p, i: (i, 0)),
            ],
            out_specs=pl.BlockSpec((tile_rows, cols), lambda p, i: (i, 0)),
            scratch_shapes=[pltpu.VMEM((1, 1), jnp.float32)],
        ),
        compiler_params=pltpu.CompilerParams(
            # Global-sum carry makes both axes sequential.
            dimension_semantics=("arbitrary", "arbitrary"),
            vmem_limit_bytes=32 * 1024 * 1024,
        ),
    )(x2d)

    return out2d.reshape(-1)[:n].reshape(orig_shape)


if __name__ == "__main__":
    key = jax.random.PRNGKey(0)
    # Shape consistent with the module's generic forward: batch=2, channels=4,
    # spatial 16x16 (any shape works; global softmax over all elements).
    x = jax.random.normal(key, (2, 4, 16, 16), dtype=jnp.float32)

    out = softmax_global(x)
    out = jax.block_until_ready(out)

    # Reference: same formula as the torch module.
    ref = jnp.exp(x) / jnp.exp(x).sum()

    assert out.shape == x.shape and out.dtype == x.dtype
    # Tolerance loosened slightly for pl.reciprocal(approx=True) (~2^-12 rel).
    assert jnp.allclose(out, ref, rtol=2e-3, atol=1e-8), "mismatch vs reference"
    assert jnp.allclose(out.sum(), 1.0, rtol=1e-3, atol=1e-3)

    print("KERNEL_OK")
</pallas_src>

<mosaic_0001>
module attributes {stable_mosaic.version = 11 : i64} {
  func.func @_softmax_kernel(%arg0: i32, %arg1: i32, %arg2: memref<8x512xf32, #tpu.memory_space<vmem>>, %arg3: memref<8x512xf32, #tpu.memory_space<vmem>>, %arg4: memref<1x1xf32, #tpu.memory_space<vmem>>) attributes {dimension_semantics = [#tpu.dimension_semantics<arbitrary>, #tpu.dimension_semantics<arbitrary>], iteration_bounds = array<i64: 2, 1>, scalar_prefetch = 0 : i64, scratch_operands = 1 : i64, tpu.core_type = #tpu.core_type<tc>, window_params = [{transform_indices = @transform_0, window_bounds = array<i64: 8, 512>}, {transform_indices = @transform_1, window_bounds = array<i64: 8, 512>}]} {
    %c0 = arith.constant 0 : index
    %c0_0 = arith.constant 0 : index
    %0 = vector.load %arg2[%c0, %c0_0] : memref<8x512xf32, #tpu.memory_space<vmem>>, vector<8x512xf32>
    %1 = math.exp %0 : vector<8x512xf32>
    %c0_i32 = arith.constant 0 : i32
    %2 = arith.cmpi eq, %arg0, %c0_i32 : i32
    %c0_i32_1 = arith.constant 0 : i32
    %3 = arith.cmpi eq, %arg1, %c0_i32_1 : i32
    %4 = arith.andi %2, %3 : i1
    %5 = arith.extui %4 : i1 to i32
    %c0_i32_2 = arith.constant 0 : i32
    %6 = arith.cmpi ne, %5, %c0_i32_2 : i32
    scf.if %6 {
      %cst = arith.constant 0.000000e+00 : f32
      %13 = vector.broadcast %cst : f32 to vector<1x1xf32>
      %c0_6 = arith.constant 0 : index
      %c0_7 = arith.constant 0 : index
      %14 = vector.load %arg4[%c0_6, %c0_7] : memref<1x1xf32, #tpu.memory_space<vmem>>, vector<1x1xf32>
      tpu.vector_store %arg4[%c0_6, %c0_7], %13 {strides = array<i32>} : memref<1x1xf32, #tpu.memory_space<vmem>>, vector<1x1xf32>,
    } else {
    }
    %c0_i32_3 = arith.constant 0 : i32
    %7 = arith.cmpi eq, %arg0, %c0_i32_3 : i32
    %8 = arith.extui %7 : i1 to i32
    %c0_i32_4 = arith.constant 0 : i32
    %9 = arith.cmpi ne, %8, %c0_i32_4 : i32
    scf.if %9 {
      %c0_6 = arith.constant 0 : index
      %c0_7 = arith.constant 0 : index
      %13 = vector.load %arg4[%c0_6, %c0_7] : memref<1x1xf32, #tpu.memory_space<vmem>>, vector<1x1xf32>
      %14 = vector.shape_cast %1 : vector<8x512xf32> to vector<1x8x512xf32>
      %cst = arith.constant dense<0.000000e+00> : vector<1xf32>
      %15 = vector.multi_reduction <add>, %14, %cst [1, 2] : vector<1x8x512xf32> to vector<1xf32>
      %16 = vector.shape_cast %15 : vector<1xf32> to vector<1x1x1xf32>
      %17 = vector.extract %16[0, 0, 0] : f32 from vector<1x1x1xf32>
      %18 = vector.broadcast %17 : f32 to vector<1x1xf32>
      %19 = arith.addf %13, %18 : vector<1x1xf32>
      %c0_8 = arith.constant 0 : index
      %c0_9 = arith.constant 0 : index
      %20 = vector.load %arg4[%c0_8, %c0_9] : memref<1x1xf32, #tpu.memory_space<vmem>>, vector<1x1xf32>
      tpu.vector_store %arg4[%c0_8, %c0_9], %19 {strides = array<i32>} : memref<1x1xf32, #tpu.memory_space<vmem>>, vector<1x1xf32>,
      %c0_10 = arith.constant 0 : index
      %c0_11 = arith.constant 0 : index
      %21 = vector.load %arg3[%c0_10, %c0_11] : memref<8x512xf32, #tpu.memory_space<vmem>>, vector<8x512xf32>
      tpu.vector_store %arg3[%c0_10, %c0_11], %1 {strides = array<i32>} : memref<8x512xf32, #tpu.memory_space<vmem>>, vector<8x512xf32>,
    } else {
    }
    %c1_i32 = arith.constant 1 : i32
    %10 = arith.cmpi eq, %arg0, %c1_i32 : i32
    %11 = arith.extui %10 : i1 to i32
    %c0_i32_5 = arith.constant 0 : i32
    %12 = arith.cmpi ne, %11, %c0_i32_5 : i32
    scf.if %12 {
      %c0_6 = arith.constant 0 : index
      %c0_7 = arith.constant 0 : index
      %13 = vector.load %arg4[%c0_6, %c0_7] : memref<1x1xf32, #tpu.memory_space<vmem>>, vector<1x1xf32>
      %14 = tpu.reciprocal %13 {approx = true} : vector<1x1xf32> -> vector<1x1xf32>
      %15 = vector.broadcast %14 : vector<1x1xf32> to vector<8x512xf32>
      %16 = arith.mulf %1, %15 : vector<8x512xf32>
      %c0_8 = arith.constant 0 : index
      %c0_9 = arith.constant 0 : index
      %17 = vector.load %arg3[%c0_8, %c0_9] : memref<8x512xf32, #tpu.memory_space<vmem>>, vector<8x512xf32>
      tpu.vector_store %arg3[%c0_8, %c0_9], %16 {strides = array<i32>} : memref<8x512xf32, #tpu.memory_space<vmem>>, vector<8x512xf32>,
    } else {
    }
    return
  }
  func.func @transform_0(%arg0: i32, %arg1: i32) -> (i32, i32) {
    %c0_i32 = arith.constant 0 : i32
    %c0_i32_0 = arith.constant 0 : i32
    return %arg1, %c0_i32 : i32, i32
  }
  func.func @transform_1(%arg0: i32, %arg1: i32) -> (i32, i32) {
    %c0_i32 = arith.constant 0 : i32
    %c0_i32_0 = arith.constant 0 : i32
    return %arg1, %c0_i32 : i32, i32
  }
}

</mosaic_0001>

<bundles_post_ra>
// kernel: tpu_custom_call.1
= control target key start
LH: loop header
LB: loop body
LE: loop exit
PB: predicated region body
PF: predicated region fallthrough
CT: control target
= control target key end

     0   :  { %6 = vsyncpa [#allocation4], 0  ;;  %s491_s0 = inlined_call_operand.hbm [shape: f32[8,512], index: 0, kind: input, shape index: {}]   ;;  %s492_s1 = inlined_call_operand.hbm [shape: f32[8,512], index: 1, kind: output, shape index: {}]  }
   0x1   :  { %7 = vsyncpa [#allocation5], 0  ;;  %s416_s6 = smov 0   ;;  %s418_s7 = smov 0  }
   0x2   :  { %s420_s8 = smov 0  }
   0x3 LB: > { %s250_s9 = sadd.s32 4294967295, %s400_s8   ;;  %s25_s10 = sadd.s32 1, %s396_s7  ;;  %s400_s8 = sphi %s420_s8, %s13_s8   ;;  %s396_s7 = sphi %s418_s7, %s497_s7   ;;  %s392_s6 = sphi %s416_s6, %s496_s6  }
   0x4   : > { %p27_p0 = scmp.ge.s32.totalorder %s25_s10, 2  ;;  %p251_p1 = scmp.ge.s32.totalorder %s400_s8, 1 }
   0x5   : > { %p82_p2 = scmp.lt.s32.totalorder %s400_s8, 3  ;;  %p443_p4 = scmp.eq.s32.totalorder %s250_s9, 0 }
   0x6   : > { %s499_s10 = smov (%p27_p0, %s25_s10), 0  ;;  %s402_s13 = smov [#allocation3]  }
   0x7   : > { %p437_p3 = pnand %p251_p1, %p82_p2  ;;  %s98_s14 = sshll.u32 %s402_s13, 4  ;;  %s99_s14 = int_to_ptr.vmem [resolvable:$true] %s98_s14 }
   0x8   : > { %s331_s15 = scalar_lea.vmem %s99_s14, 512  ;;  %p339_p11 = scmp.lt.s32.totalorder %s99_s14, %s99_s14 }
   0x9   : > { %p273_p5 = pneg %p437_p3  ;;  %p332_p8 = scmp.ne.s32.totalorder %s99_s14, %s331_s15 }
   0xa   : > { %p340_p12 = scmp.lt.s32.totalorder %s331_s15, %s331_s15 }
   0xb   : > { %p274_p6 = pnand %p443_p4, %p273_p5 }
   0xc   : > { %p341_p13 = por %p340_p12, %p339_p11 }
   0xd   : > { %p322_p7 = pneg %p274_p6 }
   0xf   : > { %p334_p9 = pnand %p332_p8, %p322_p7 }
  0x11   : > { %p335_p10 = pneg %p334_p9 }
  0x13   : > { %p342_p0 = pnand %p341_p13, %p335_p10 }
  0x15   : > { %345 = shalt.err (!%p342_p0)
}
  0x16   : > { %276 = dma.hbm_to_vmem [thread:$0]  (!%p274_p6), %s491_s0, 512, %s99_s14, [#allocation4]  }
  0x17   : > { %111 = sbr.rel (%p437_p3) target bundleno = 433 (0x1b1), region = 24 }
  0x1c   : > { %383 = dma.done.wait (%p443_p4), [#allocation4], 512  }
  0x1d   : > { %385 = vsyncadd (%p443_p4), [#allocation4], 4294966784  ;;  %p133_p1 = scmp.eq.s32.totalorder %s392_s6, 0  ;;  %v121_v0 = vld [vmem:[#allocation3] sm:$0xff]  ;;  %v122_v1 = vld [vmem:[#allocation3 + $0x8] sm:$0xff] }
  0x1e   : > { %v123_v2 = vld [vmem:[#allocation3 + $0x10] sm:$0xff]  ;;  %v124_v3 = vld [vmem:[#allocation3 + $0x18] sm:$0xff]  ;;  %v125_v4 = vmul.f32 1.442695, %v121_v0  ;;  %v127_v5 = vmul.f32 1.442695, %v122_v1 }
  0x1f   : > { %v129_v6 = vmul.f32 1.442695, %v123_v2  ;;  %v131_v7 = vmul.f32 1.442695, %v124_v3  ;;  %vm139_vm0 = vcmask (%p133_p1), 0   ;;  %v403_v12 = vmov (%p133_p1), 0.0  }
  0x20   : > { %309 = vpow2.f32 %v125_v4  ;;  %140 = vst.msk [vmem:[#allocation2] sm:$0x1] (%p133_p1), %vm139_vm0, %v403_v12 }
  0x21   : > { %311 = vpow2.f32 %v127_v5 }
  0x22   : > { %313 = vpow2.f32 %v129_v6 }
  0x23   : > { %315 = vpow2.f32 %v131_v7 }
  0x2c   : > { %138 = sbr.rel (!%p133_p1) target bundleno = 49 (0x31), region = 32 }
  0x2d   : > { %v310_v8 = vpop.eup %309 }
  0x2e   : > { %v312_v9 = vpop.eup %311 }
  0x2f   : > { %v314_v10 = vpop.eup %313 }
  0x30   : > { %v316_v11 = vpop.eup %315 }
  0x31 PF: > { %p256_p2 = scmp.ne.s32.totalorder %s392_s6, 0 }
  0x33   : > { %143 = sbr.rel (%p256_p2) target bundleno = 266 (0x10a), region = 36 }
  0x38   : > { %v145_v13 = vadd.f32 %v312_v9, %v310_v8  ;;  %161 = vst [vmem:[#allocation6] sm:$0xff] %v310_v8  ;;  %162 = vst [vmem:[#allocation6 + $0x8] sm:$0xff] %v312_v9  ;;  %v144_v23 = vld [vmem:[#allocation2] sm:$0x1]  ;;  %vm159_vm1 = vcmask 0  }
  0x39   : > { %163 = vst [vmem:[#allocation6 + $0x10] sm:$0xff] %v314_v10  ;;  %164 = vst [vmem:[#allocation6 + $0x18] sm:$0xff] %v316_v11 }
  0x3a   : > { %v146_v14 = vadd.f32 %v314_v10, %v145_v13 }
  0x3c   : > { %v147_v15 = vadd.f32 %v316_v11, %v146_v14 }
  0x3e   : > { %148 = vadd.xlane.f32.xlu0 %v147_v15 }
  0xc7   : > { %v149_v16 = vpop.xlane.xlu0 %148 }
  0xc8   : > { %v150_v17 = vrot.slane %v149_v16, 4 }
  0xca   : > { %v151_v18 = vadd.f32 %v150_v17, %v149_v16 }
  0xcc   : > { %v152_v19 = vrot.slane %v151_v18, 2 }
  0xce   : > { %v153_v20 = vadd.f32 %v152_v19, %v151_v18 }
  0xd0   : > { %v154_v21 = vrot.slane %v153_v20, 1 }
  0xd2   : > { %v155_v22 = vadd.f32 %v154_v21, %v153_v20 }
  0xd4   : > { %263 = vpush %v155_v22 }
 0x105   : > { %s264_s18 = spop %263 }
 0x106   : > { %v157_v24 = vstv %s264_s18 }
 0x107   : > { %v158_v25 = vadd.f32 %v157_v24, %v144_v23 }
 0x109   : > { %160 = vst.msk [vmem:[#allocation2] sm:$0x1] %vm159_vm1, %v158_v25 }
 0x10a PF: > { %p257_p3 = scmp.ne.s32.totalorder %s392_s6, 1 }
 0x10c   : > { %168 = sbr.rel (%p257_p3) target bundleno = 418 (0x1a2), region = 40 }
 0x111   : > { %v169_v26 = vld [vmem:[#allocation2] sm:$0x1]  ;;  %v404_v27 = vmov 0   ;;  %v172_v28 = vlaneseq }
 0x112   : > { %317 = vset.pattern.permute.xlu0 %v404_v27  ;;  %318 = vrcp.f32 %v169_v26 }
 0x113   : > { %v173_v29 = vshrl.u32 %v172_v28, 7 }
 0x115   : > { %v174_v30 = vsub.s32 0, %v173_v29 }
 0x11f   : > { %v319_v31 = vpop.eup %318 }
 0x120   : > { %v175_v32 = vrot.slane %v319_v31, %v174_v30 }
 0x122   : > { %177 = vperm.xlu0 %317, %v175_v32  }
 0x19d   : > { %v178_v33 = vpop.permute.xlu0 %177 }
 0x19e   : > { %v180_v34 = vmul.f32 %v310_v8, %v178_v33  ;;  %v181_v35 = vmul.f32 %v312_v9, %v178_v33  ;;  %v182_v36 = vmul.f32 %v314_v10, %v178_v33  ;;  %v183_v37 = vmul.f32 %v316_v11, %v178_v33 }
 0x1a0   : > { %184 = vst [vmem:[#allocation6] sm:$0xff] %v180_v34  ;;  %185 = vst [vmem:[#allocation6 + $0x8] sm:$0xff] %v181_v35 }
 0x1a1   : > { %186 = vst [vmem:[#allocation6 + $0x10] sm:$0xff] %v182_v36  ;;  %187 = vst [vmem:[#allocation6 + $0x18] sm:$0xff] %v183_v37 }
 0x1a2 PF: > { %p467_p4 = scmp.eq.s32.totalorder %s250_s9, 1  ;;  %s405_s20 = smov [#allocation6]  }
 0x1a3   : > { %s198_s21 = sshll.u32 %s405_s20, 4  ;;  %s199_s21 = int_to_ptr.vmem [resolvable:$true] %s198_s21 }
 0x1a4   : > { %s346_s22 = scalar_lea.vmem %s199_s21, 512  ;;  %p353_p8 = scmp.lt.s32.totalorder %s199_s21, %s199_s21 }
 0x1a5   : > { %p347_p5 = scmp.ne.s32.totalorder %s199_s21, %s346_s22  ;;  %p354_p9 = scmp.lt.s32.totalorder %s346_s22, %s346_s22 }
 0x1a7   : > { %p348_p6 = pnand %p347_p5, %p467_p4  ;;  %p355_p10 = por %p354_p9, %p353_p8 }
 0x1a9   : > { %p349_p7 = pneg %p348_p6 }
 0x1ab   : > { %p356_p11 = pnand %p355_p10, %p349_p7 }
 0x1ad   : > { %359 = shalt.err (!%p356_p11)
}
 0x1ae   : > { %270 = dma.vmem_to_hbm [thread:$0]  (%p467_p4), %s199_s21, 512, %s492_s1, [#allocation5]  }
 0x1af   : > { %387 = dma.done.wait (%p467_p4), [#allocation5], 512  }
 0x1b0   : > { %389 = vsyncadd (%p467_p4), [#allocation5], 4294966784 }
 0x1b1 PF: > { %s13_s8 = sadd.s32 1, %s400_s8   ;;  %s496_s6 = smov %s396_s7 }
 0x1b2   : > { %p10_p12 = scmp.ge.s32.totalorder %s13_s8, 4   ;;  %s497_s7 = smov %s499_s10 }
 0x1b4   :  { %12 = sbr.rel (!%p10_p12) target bundleno = 3 (0x3), region = 67 }
 0x1b9   :  { %211 = vsyncpa [#allocation4], 1 }
 0x1ba   :  { %213 = vsyncpa [#allocation4 + $0x1], 1 }
 0x1bb   :  { %214 = vsyncpa [#allocation5], 1 }
 0x1bc   :  { %216 = vsyncpa [#allocation5 + $0x1], 1 }

</bundles_post_ra>
